<compile_context>
chip_gen: v7x
topology: tpu7x:2x2x1
jax: 0.10.0
libtpu: 0.0.40
codegen_flags: <defaults>
</compile_context>

<pallas_src>
import math

import jax
import jax.numpy as jnp
from jax.experimental import pallas as pl
from jax.experimental.pallas import tpu as pltpu


# --------------------------------------------------------------------------- PE table (init time)
def make_positional_encoding(d_model: int, max_len: int = 5000, dtype=jnp.float32) -> jnp.ndarray:
    """Sinusoidal PE table, shape (max_len, d_model). Build ONCE at init. If the model runs in
    bf16, pass dtype=jnp.bfloat16 so the hot path never re-casts the table per call."""
    position = jnp.arange(max_len, dtype=jnp.float32)[:, None]                 # (max_len, 1)
    div_term = jnp.exp(
        jnp.arange(0, d_model, 2, dtype=jnp.float32)
        * (-jnp.log(jnp.float32(10000.0)) / d_model)
    )                                                                          # (ceil(d/2),)
    pe = jnp.zeros((max_len, d_model), dtype=jnp.float32)
    pe = pe.at[:, 0::2].set(jnp.sin(position * div_term))
    pe = pe.at[:, 1::2].set(jnp.cos(position * div_term[: d_model // 2]))
    return pe.astype(dtype)


# --------------------------------------------------------------------------- kernel
def _add_pe_kernel(x_ref, pe_ref, o_ref):
    # x_ref / o_ref: (B, tS, tD) tile; pe_ref: (tS, tD) tile (numpy-broadcast over batch).
    o_ref[...] = x_ref[...] + pe_ref[...]


# --------------------------------------------------------------------------- tiling heuristics
_MIN_GRID_STEPS = 8                         # enough steps to pipeline + split across v7x cores
_VMEM_WS_BUDGET = 24 * 1024 * 1024          # hard cap on the double-buffered working set


def _sublane(itemsize: int) -> int:
    # sublane granularity: f32 -> 8 rows, bf16 -> 16, int8/fp8 -> 32
    return {4: 8, 2: 16, 1: 32}.get(itemsize, 8)


def _target_block_bytes() -> int:
    # Per-grid-step overhead ~0.35 us. v7x (~3.2 TB/s HBM) needs >=~4 MiB steps to amortize it;
    # v5e/v6e are already fully amortized at ~2 MiB.
    try:
        kind = jax.devices()[0].device_kind.lower()
        if "7" in kind:
            return 4 * 1024 * 1024
    except Exception:
        pass
    return 2 * 1024 * 1024


def _choose_seq_tile(B: int, S: int, D: int, itemsize: int, target_bytes: int) -> int:
    """Sequence tile: big enough to amortize per-step overhead, small enough for pipeline depth."""
    sub = _sublane(itemsize)
    if S <= sub:
        return S
    row_bytes = max(B * D * itemsize, 1)                        # one seq row of the x block
    ts_bw = target_bytes // row_bytes                           # per-step x block ~target_bytes
    ts_pipe = pl.cdiv(S, _MIN_GRID_STEPS)                       # >= _MIN_GRID_STEPS steps if possible
    ts_vmem = _VMEM_WS_BUDGET // max(2 * (2 * B + 1) * D * itemsize, 1)   # double-buffered ws cap
    ts = min(ts_bw, ts_pipe, ts_vmem, S)
    ts = max((ts // sub) * sub, sub)                            # sublane-aligned, at least one tile
    return min(ts, S)


# --------------------------------------------------------------------------- forward
def positional_encoding_forward(x: jnp.ndarray, pe_table: jnp.ndarray, *, donate_x: bool = False):
    """x: (B, S, D) batch-first, pe_table: (max_len, D). Returns x + pe[:S] (broadcast over batch)."""
    B, S, D = x.shape
    max_len = pe_table.shape[0]
    if S > max_len:
        raise ValueError(f"sequence length {S} exceeds PE table max_len {max_len}")
    if pe_table.dtype != x.dtype:
        # Prefer building the table in the model dtype at init; this cast is a fallback only.
        pe_table = pe_table.astype(x.dtype)

    # Lane-density fold: if d_model isn't a multiple of 128, merge whole rows into the lane axis.
    # Trailing contiguous-dim merges are free (no copy) and make output stores unmasked vst.
    fold = 1
    if D % 128 != 0:
        f = 128 // math.gcd(D, 128)
        if S % f == 0 and max_len % f == 0:
            fold = f
        # TODO(synk): when S % fold != 0, pad S up to a fold multiple instead of running with a
        # <128-lane last dim (masked stores).
    S_eff, D_eff = S // fold, D * fold
    max_len_eff = max_len // fold

    x_r = x.reshape(B, S_eff, D_eff)
    pe_r = pe_table.reshape(max_len_eff, D_eff)

    itemsize = jnp.dtype(x.dtype).itemsize
    sub = _sublane(itemsize)
    tS = _choose_seq_tile(B, S_eff, D_eff, itemsize, _target_block_bytes())
    if tS % sub != 0:
        # Tiny S_eff (< one sublane group): make every block dim equal its full array dim so the
        # (8,128) block rule holds for the PE operand too. Copies <= `sub` PE rows — negligible.
        pe_r = pe_r[:S_eff]

    grid_s = pl.cdiv(S_eff, tS)
    tD = D_eff
    if grid_s < _MIN_GRID_STEPS and D_eff % 128 == 0 and D_eff >= 256:
        # Short sequence but wide model: tile the lane axis too, restoring pipeline depth (and v7x
        # megacore splitting) without re-reading PE.
        n_d = min(D_eff // 128, pl.cdiv(_MIN_GRID_STEPS, grid_s))
        tD = pl.cdiv(pl.cdiv(D_eff, n_d), 128) * 128
    grid = (grid_s, pl.cdiv(D_eff, tD))

    # Scoped-VMEM limit derived from the actual double-buffered working set (x + out + pe blocks),
    # not a 128-MiB-chip constant; comfortably inside v7x's 64 MiB per-TC VMEM.
    ws = 2 * (2 * B * tS * tD + tS * tD) * itemsize
    vmem_limit = int(min(max(2 * ws, 16 * 1024 * 1024), 128 * 1024 * 1024))

    out = pl.pallas_call(
        _add_pe_kernel,
        out_shape=jax.ShapeDtypeStruct((B, S_eff, D_eff), x.dtype),
        grid_spec=pltpu.PrefetchScalarGridSpec(
            num_scalar_prefetch=0,
            grid=grid,
            in_specs=[
                pl.BlockSpec((B, tS, tD), lambda s, d: (0, s, d)),  # x: all batches, one (seq, lane) tile
                pl.BlockSpec((tS, tD), lambda s, d: (s, d)),        # PE tile: each element fetched once
            ],
            out_specs=pl.BlockSpec((B, tS, tD), lambda s, d: (0, s, d)),
        ),
        compiler_params=pltpu.CompilerParams(
            dimension_semantics=("parallel", "parallel"),           # both grid axes independent
            vmem_limit_bytes=vmem_limit,
        ),
        input_output_aliases=({0: 0} if donate_x else {}),          # reuse x's buffer when donated
    )(x_r, pe_r)

    return out.reshape(B, S, D)


if __name__ == "__main__":
    B, S, D = 2, 8, 32
    max_len = 64  # >= S, same construction as the PyTorch buffer

    key = jax.random.PRNGKey(0)
    x = jax.random.normal(key, (B, S, D), dtype=jnp.float32)

    pe_table = make_positional_encoding(D, max_len, dtype=x.dtype)   # init-time, cached

    out = positional_encoding_forward(x, pe_table)
    out = jax.block_until_ready(out)

    # Reference check in plain JAX (same math as the PyTorch forward: x + pe[:, :S])
    ref = x + pe_table[None, :S, :]
    assert out.shape == (B, S, D)
    assert jnp.allclose(out, ref, atol=1e-6), "mismatch vs reference"

    print("KERNEL_OK")
</pallas_src>

<mosaic_0001>
module attributes {stable_mosaic.version = 11 : i64} {
  func.func @_add_pe_kernel(%arg0: i32, %arg1: i32, %arg2: memref<2x2x128xf32, #tpu.memory_space<vmem>>, %arg3: memref<2x128xf32, #tpu.memory_space<vmem>>, %arg4: memref<2x2x128xf32, #tpu.memory_space<vmem>>) attributes {dimension_semantics = [#tpu.dimension_semantics<parallel>, #tpu.dimension_semantics<parallel>], iteration_bounds = array<i64: 1, 1>, scalar_prefetch = 0 : i64, scratch_operands = 0 : i64, tpu.core_type = #tpu.core_type<tc>, window_params = [{transform_indices = @transform_0, window_bounds = array<i64: 2, 2, 128>}, {transform_indices = @transform_1, window_bounds = array<i64: 2, 128>}, {transform_indices = @transform_2, window_bounds = array<i64: 2, 2, 128>}]} {
    %c0 = arith.constant 0 : index
    %c0_0 = arith.constant 0 : index
    %c0_1 = arith.constant 0 : index
    %0 = vector.load %arg2[%c0, %c0_0, %c0_1] : memref<2x2x128xf32, #tpu.memory_space<vmem>>, vector<2x2x128xf32>
    %c0_2 = arith.constant 0 : index
    %c0_3 = arith.constant 0 : index
    %1 = vector.load %arg3[%c0_2, %c0_3] : memref<2x128xf32, #tpu.memory_space<vmem>>, vector<2x128xf32>
    %2 = vector.shape_cast %1 : vector<2x128xf32> to vector<1x2x128xf32>
    %3 = vector.broadcast %2 : vector<1x2x128xf32> to vector<2x2x128xf32>
    %4 = arith.addf %0, %3 : vector<2x2x128xf32>
    %c0_4 = arith.constant 0 : index
    %c0_5 = arith.constant 0 : index
    %c0_6 = arith.constant 0 : index
    %5 = vector.load %arg4[%c0_4, %c0_5, %c0_6] : memref<2x2x128xf32, #tpu.memory_space<vmem>>, vector<2x2x128xf32>
    tpu.vector_store %arg4[%c0_4, %c0_5, %c0_6], %4 {strides = array<i32>} : memref<2x2x128xf32, #tpu.memory_space<vmem>>, vector<2x2x128xf32>,
    return
  }
  func.func @transform_0(%arg0: i32, %arg1: i32) -> (i32, i32, i32) {
    %c0_i32 = arith.constant 0 : i32
    %c0_i32_0 = arith.constant 0 : i32
    return %c0_i32, %arg0, %arg1 : i32, i32, i32
  }
  func.func @transform_1(%arg0: i32, %arg1: i32) -> (i32, i32) {
    %c0_i32 = arith.constant 0 : i32
    return %arg0, %arg1 : i32, i32
  }
  func.func @transform_2(%arg0: i32, %arg1: i32) -> (i32, i32, i32) {
    %c0_i32 = arith.constant 0 : i32
    %c0_i32_0 = arith.constant 0 : i32
    return %c0_i32, %arg0, %arg1 : i32, i32, i32
  }
}

</mosaic_0001>

<bundles_post_ra>
// kernel: tpu_custom_call.1
= control target key start
LH: loop header
LB: loop body
LE: loop exit
PB: predicated region body
PF: predicated region fallthrough
CT: control target
= control target key end

     0   :  { %7 = vsyncpa [#allocation3], 0  ;;  %s154_s0 = inlined_call_operand.hbm [shape: f32[2,2,128], index: 0, kind: input, shape index: {}]   ;;  %s155_s1 = inlined_call_operand.vmem [shape: f32[2,128], index: 1, kind: input, shape index: {}]   ;;  %s156_s2 = inlined_call_operand.hbm [shape: f32[2,2,128], index: 2, kind: output, shape index: {}]  }
   0x1   :  { %8 = vsyncpa [#allocation4], 0  ;;  %s102_s9 = smov [#allocation2]   ;;  %s54_s13 = scalar_lea.hbm %s154_s0, 64 }
   0x2   :  { %s14_s10 = sshll.u32 %s102_s9, 4  ;;  %p55_p0 = scmp.ne.s32.totalorder %s154_s0, %s54_s13  ;;  %s15_s10 = int_to_ptr.vmem [resolvable:$true] %s14_s10 }
   0x3   :  { %p58_p1 = scmp.lt.u32.totalorder %s54_s13, %s154_s0 }
   0x5   :  { %p60_p2 = pnand %p58_p1, %p55_p0 }
   0x7   :  { %63 = shalt.err (!%p60_p2)
}
   0x8   :  { %s64_s18 = scalar_lea.vmem %s15_s10, 64  ;;  %p69_p4 = scmp.lt.s32.totalorder %s15_s10, %s15_s10 }
   0x9   :  { %p65_p3 = scmp.ne.s32.totalorder %s15_s10, %s64_s18  ;;  %p70_p5 = scmp.lt.s32.totalorder %s64_s18, %s64_s18 }
   0xb   :  { %p71_p6 = por %p70_p5, %p69_p4 }
   0xd   :  { %p72_p7 = pnand %p71_p6, %p65_p3 }
   0xf   :  { %75 = shalt.err (!%p72_p7)
}
  0x10   :  { %s103_s19 = smov 32   ;;  %s104_s20 = smov 2  }
  0x11   :  { %20 = dma.hbm_to_vmem [thread:$0]  %s154_s0, 64, %s15_s10, [#allocation3], %s103_s19, %s103_s19, %s104_s20  }
  0x12   :  { %98 = dma.done.wait [#allocation3], 64  }
  0x13   :  { %99 = vsyncadd [#allocation3], 4294967232  ;;  %s105_s23 = smov [#allocation5]   ;;  %v26_v0 = vld [vmem:[#allocation2] sm:$0x3] }
  0x14   :  { %s38_s24 = sshll.u32 %s105_s23, 4  ;;  %v28_v1 = vld [vmem:[%s155_s1] sm:$0x3]  ;;  %v27_v2 = vld [vmem:[#allocation2 + $0x2] sm:$0x3]  ;;  %s39_s24 = int_to_ptr.vmem [resolvable:$true] %s38_s24 }
  0x15   :  { %v29_v3 = vadd.f32 %v28_v1, %v26_v0  ;;  %v30_v4 = vadd.f32 %v28_v1, %v27_v2  ;;  %s76_s27 = scalar_lea.vmem %s39_s24, 64  ;;  %p81_p9 = scmp.lt.s32.totalorder %s39_s24, %s39_s24 }
  0x16   :  { %p77_p8 = scmp.ne.s32.totalorder %s39_s24, %s76_s27  ;;  %p82_p10 = scmp.lt.s32.totalorder %s76_s27, %s76_s27 }
  0x17   :  { %31 = vst [vmem:[#allocation5] sm:$0x3] %v29_v3  ;;  %32 = vst [vmem:[#allocation5 + $0x2] sm:$0x3] %v30_v4 }
  0x18   :  { %p83_p11 = por %p82_p10, %p81_p9 }
  0x1a   :  { %p84_p12 = pnand %p83_p11, %p77_p8 }
  0x1c   :  { %87 = shalt.err (!%p84_p12)
}
  0x1d   :  { %s88_s29 = scalar_lea.hbm %s156_s2, 64 }
  0x1e   :  { %p89_p13 = scmp.ne.s32.totalorder %s156_s2, %s88_s29  ;;  %p92_p0 = scmp.lt.u32.totalorder %s88_s29, %s156_s2 }
  0x20   :  { %p94_p1 = pnand %p92_p0, %p89_p13 }
  0x22   :  { %97 = shalt.err (!%p94_p1)
}
  0x23   :  { %44 = dma.vmem_to_hbm [thread:$0]  %s39_s24, 64, %s156_s2, [#allocation4], %s103_s19, %s103_s19, %s104_s20  }
  0x24   :  { %100 = dma.done.wait [#allocation4], 64  }
  0x25   :  { %101 = vsyncadd [#allocation4], 4294967232 }
  0x26   :  { %48 = vsyncpa [#allocation3], 1 }
  0x27   :  { %49 = vsyncpa [#allocation4], 1 }

</bundles_post_ra>
